<compile_context>
chip_gen: v5e
topology: v5e:2x2
jax: 0.10.0
libtpu: 0.0.40
codegen_flags: <defaults>
</compile_context>

<pallas_src>
import jax
import jax.numpy as jnp
from jax.experimental import pallas as pl
from jax.experimental.pallas import tpu as pltpu

EPS = 1e-5


def _vmem_limit_bytes() -> int:
    """Generation-aware scoped-VMEM limit for tile sizing."""
    try:
        cap = int(pltpu.get_tpu_info().vmem_capacity_bytes)
    except Exception:  # pragma: no cover - conservative fallback
        cap = 64 * 1024 * 1024  # assume the smallest (v7x per-TC) VMEM
    if cap >= 128 * 1024 * 1024:       # v5e / v6e: 128 MiB physical VMEM
        return 96 * 1024 * 1024
    return int(cap * 0.65)             # v7x: 64 MiB/TC -> ~41 MiB


def _hnorm_kernel(x_ref, o_ref):
    x = x_ref[...]
    # Row-sum accumulated in f32 (XLU lane-reduce).  Only the reduction path is
    # f32, so no full-tile f32 copy of x has to live in VMEM/vregs.
    denom = jnp.sum(x.astype(jnp.float32), axis=-1, keepdims=True) + EPS
    inv = pl.reciprocal(denom, approx=False)          # EUP slot, exact
    if x.dtype == jnp.float32:
        o_ref[...] = x * inv                           # exact f32 path
    else:
        # Narrow dtypes (bf16/f16): multiply in the input dtype.  Halves
        # vreg/VMEM pressure; inv rounded to the input dtype stays within the
        # output ULP.
        o_ref[...] = (x * inv.astype(x.dtype)).astype(o_ref.dtype)


def _pick_row_tile(n: int, f: int, itemsize: int) -> int:
    """Row tile from the VMEM budget: 2x-buffered input + 2x-buffered output."""
    budget = int(_vmem_limit_bytes() * 0.8)            # headroom for compiler scratch
    per_row = 4 * f * itemsize                         # 2*in + 2*out, input dtype
    max_rows = max(1, budget // per_row)
    # Native sublane packing: 8 rows for 4-byte dtypes, 16 for 2-byte, 32 for 1-byte.
    sub = 8 * max(1, 4 // itemsize)
    max_rows = max(sub, (max_rows // sub) * sub)

    # Target >=4 grid steps (>=2 tiles per TensorCore on v7x) and an even count
    # so both cores get balanced work and DMA overlaps compute.
    min_steps = pl.cdiv(n, max_rows)
    steps = max(min_steps, 4)
    if steps % 2 == 1:
        steps += 1
    rows = ((pl.cdiv(n, steps) + sub - 1) // sub) * sub
    rows = max(sub, min(rows, max_rows))
    return int(rows)


def hnormalization(x: jax.Array) -> jax.Array:
    """Hyperbolic normalization over the last axis (matches the PyTorch module)."""
    orig_shape = x.shape
    f = orig_shape[-1]
    x2 = x.reshape(-1, f)                               # collapse leading dims -> (N, F)
    n = x2.shape[0]

    # Lane-dense output: pad F up to a multiple of 128 (zeros leave row sums
    # unchanged), so every store is a full unmasked vst; slice the pad back off.
    f_pad = ((f + 127) // 128) * 128
    padded = f_pad != f
    if padded:
        x2 = jnp.pad(x2, ((0, 0), (0, f_pad - f)))

    itemsize = x2.dtype.itemsize
    row_tile = _pick_row_tile(n, f_pad, itemsize)
    grid = (pl.cdiv(n, row_tile),)                      # ragged last block is masked

    out = pl.pallas_call(
        _hnorm_kernel,
        out_shape=jax.ShapeDtypeStruct((n, f_pad), x2.dtype),
        grid_spec=pltpu.PrefetchScalarGridSpec(
            num_scalar_prefetch=0,
            grid=grid,
            in_specs=[pl.BlockSpec((row_tile, f_pad), lambda i: (i, 0))],
            out_specs=pl.BlockSpec((row_tile, f_pad), lambda i: (i, 0)),
        ),
        compiler_params=pltpu.CompilerParams(
            dimension_semantics=("parallel",),
            vmem_limit_bytes=_vmem_limit_bytes(),
        ),
        cost_estimate=pl.CostEstimate(
            flops=2 * n * f_pad,
            transcendentals=n,
            bytes_accessed=2 * n * f_pad * itemsize,
        ),
    )(x2)

    if padded:
        out = out[:, :f]
    return out.reshape(orig_shape)


if __name__ == "__main__":
    key = jax.random.PRNGKey(0)
    k1, k2, k3 = jax.random.split(key, 3)

    # Test 1: f32, counts-like input consistent with the module (N x genes).
    x = jax.random.uniform(k1, (16, 256), dtype=jnp.float32)
    out = jax.block_until_ready(hnormalization(x))
    ref = x / (jnp.sum(x, axis=-1, keepdims=True) + EPS)
    assert out.shape == x.shape and out.dtype == x.dtype
    assert jnp.allclose(out, ref, atol=1e-6, rtol=1e-6)

    # Test 2: bf16 + ragged batch (f32 accumulation, input-dtype multiply, cdiv mask).
    xb = jax.random.uniform(k2, (50, 384), dtype=jnp.float32).astype(jnp.bfloat16)
    outb = jax.block_until_ready(hnormalization(xb))
    xbf = xb.astype(jnp.float32)
    refb = (xbf / (jnp.sum(xbf, axis=-1, keepdims=True) + EPS)).astype(jnp.bfloat16)
    assert outb.shape == xb.shape and outb.dtype == jnp.bfloat16
    assert jnp.allclose(outb.astype(jnp.float32), refb.astype(jnp.float32),
                        atol=1e-2, rtol=1e-2)

    # Test 3: 3-D input with a non-multiple-of-128 feature axis (exercises the
    # lane-padding path and the leading-dim collapse).
    xr = jax.random.uniform(k3, (2, 4, 200), dtype=jnp.float32)
    outr = jax.block_until_ready(hnormalization(xr))
    refr = xr / (jnp.sum(xr, axis=-1, keepdims=True) + EPS)
    assert outr.shape == xr.shape and outr.dtype == xr.dtype
    assert jnp.allclose(outr, refr, atol=1e-6, rtol=1e-6)

    print("KERNEL_OK")
</pallas_src>

<mosaic_0001>
module attributes {stable_mosaic.version = 11 : i64} {
  func.func @_hnorm_kernel(%arg0: i32, %arg1: memref<8x256xf32, #tpu.memory_space<vmem>>, %arg2: memref<8x256xf32, #tpu.memory_space<vmem>>) attributes {dimension_semantics = [#tpu.dimension_semantics<parallel>], iteration_bounds = array<i64: 2>, scalar_prefetch = 0 : i64, scratch_operands = 0 : i64, tpu.core_type = #tpu.core_type<tc>, window_params = [{transform_indices = @transform_0, window_bounds = array<i64: 8, 256>}, {transform_indices = @transform_1, window_bounds = array<i64: 8, 256>}]} {
    %c0 = arith.constant 0 : index
    %c0_0 = arith.constant 0 : index
    %0 = vector.load %arg1[%c0, %c0_0] : memref<8x256xf32, #tpu.memory_space<vmem>>, vector<8x256xf32>
    %cst = arith.constant dense<0.000000e+00> : vector<8xf32>
    %1 = vector.multi_reduction <add>, %0, %cst [1] : vector<8x256xf32> to vector<8xf32>
    %2 = vector.shape_cast %1 : vector<8xf32> to vector<8x1xf32>
    %cst_1 = arith.constant 9.99999974E-6 : f32
    %3 = vector.broadcast %cst_1 : f32 to vector<8x1xf32>
    %4 = arith.addf %2, %3 : vector<8x1xf32>
    %5 = tpu.reciprocal %4 : vector<8x1xf32> -> vector<8x1xf32>
    %6 = vector.broadcast %5 : vector<8x1xf32> to vector<8x256xf32>
    %7 = arith.mulf %0, %6 : vector<8x256xf32>
    %c0_2 = arith.constant 0 : index
    %c0_3 = arith.constant 0 : index
    %8 = vector.load %arg2[%c0_2, %c0_3] : memref<8x256xf32, #tpu.memory_space<vmem>>, vector<8x256xf32>
    tpu.vector_store %arg2[%c0_2, %c0_3], %7 {strides = array<i32>} : memref<8x256xf32, #tpu.memory_space<vmem>>, vector<8x256xf32>,
    return
  }
  func.func @transform_0(%arg0: i32) -> (i32, i32) {
    %c0_i32 = arith.constant 0 : i32
    %c0_i32_0 = arith.constant 0 : i32
    return %arg0, %c0_i32 : i32, i32
  }
  func.func @transform_1(%arg0: i32) -> (i32, i32) {
    %c0_i32 = arith.constant 0 : i32
    %c0_i32_0 = arith.constant 0 : i32
    return %arg0, %c0_i32 : i32, i32
  }
}

</mosaic_0001>

<bundles_post_ra>
// kernel: tpu_custom_call.1
= control target key start
LH: loop header
LB: loop body
LE: loop exit
PB: predicated region body
PF: predicated region fallthrough
CT: control target
= control target key end

     0   :  { %6 = vsyncpa [#allocation3], 0  ;;  %s545_s0 = inlined_call_operand.hbm [shape: f32[16,256], index: 0, kind: input, shape index: {}]   ;;  %s546_s1 = inlined_call_operand.hbm [shape: f32[16,256], index: 1, kind: output, shape index: {}]  }
   0x1   :  { %8 = vsyncpa [#allocation3 + $0x1], 0 }
   0x2   :  { %9 = vsyncpa [#allocation4], 0 }
   0x3   :  { %11 = vsyncpa [#allocation4 + $0x1], 0  ;;  %s418_s6 = smov 0   ;;  %s420_s7 = smov 0  }
   0x4   :  { %s422_s8 = smov 0   ;;  %s424_s9 = smov 0  }
   0x5 LB: > { %s439_s10 = sadd.s32 4294967295, %s406_s9   ;;  %s246_s11 = sadd.s32 4294967294, %s406_s9   ;;  %s406_s9 = sphi %s424_s9, %s556_s9   ;;  %s402_s8 = sphi %s422_s8, %s555_s8   ;;  %s398_s7 = sphi %s420_s7, %s554_s7   ;;  %s394_s6 = sphi %s418_s6, %s553_s6  }
   0x6   : > { %s443_s12 = sadd.s32 1, %s406_s9   ;;  %s24_s13 = sadd.s32 1, %s402_s8 }
   0x7   : > { %s21_s14 = ssub.s32 %s406_s9, %s443_s12  ;;  %p31_p0 = scmp.ne.s32.totalorder %s402_s8, %s398_s7 }
   0x8   : > { %p22_p1 = scmp.eq.s32.totalorder %s21_s14, 0  ;;  %p32_p2 = scmp.eq.s32.totalorder %s406_s9, 0 }
   0x9   : > { %p37_p3 = scmp.ne.s32.totalorder %s398_s7, %s394_s6  ;;  %p38_p4 = scmp.eq.s32.totalorder %s439_s10, 0 }
   0xa   : > { %s455_s15 = scalar_select %p22_p1, %s402_s8, %s24_s13  }
   0xb   : > { %p457_p5 = por %p32_p2, %p31_p0  ;;  %p461_p6 = por %p38_p4, %p37_p3 }
   0xc   : > { %p61_p7 = scmp.eq.s32.totalorder %s439_s10, 1  ;;  %p67_p8 = scmp.eq.s32.totalorder %s246_s11, 1 }
   0xd   : > { %p274_p10 = scmp.lt.s32.totalorder %s406_s9, 2  ;;  %s87_s20 = sand.u32 1, %s402_s8  }
   0xe   : > { %p468_p11 = por %p61_p7, %p31_p0  ;;  %p472_p12 = por %p67_p8, %p37_p3 }
   0xf   : > { %s260_s21 = sshll.u32 %s406_s9, 4  ;;  %s249_s22 = sshll.u32 %s87_s20, 4 }
  0x10   : > { %s96_s25 = scalar_lea.hbm %s545_s0, %s260_s21  ;;  %s91_s27 = scalar_lea.vmem [#allocation2], %s249_s22 }
  0x11   : > { %s98_s26 = sshll.u32 %s96_s25, 4  ;;  %s100_s28 = sshll.u32 %s91_s27, 4  ;;  %s99_s26 = int_to_ptr.hbm [resolvable:$true] %s98_s26  ;;  %s101_s28 = int_to_ptr.vmem [resolvable:$true] %s100_s28 }
  0x12   : > { %p483_p13 = pnand %p274_p10, %p457_p5  ;;  %p252_p0 = scmp.ge.s32.totalorder %s406_s9, 1 }
  0x13   : > { %p105_p1 = scmp.lt.s32.totalorder %s406_s9, 3  ;;  %s88_s30 = scalar_lea.sflag [#allocation3], %s87_s20 }
  0x14   : > { %s310_s2 = sshra.s32 %s99_s26, 4  ;;  %p314_p3 = pneg %p483_p13  ;;  %s311_s2 = int_to_ptr.hbm [resolvable:$true] %s310_s2 }
  0x15   : > { %s312_s3 = scalar_lea.hbm %s311_s2, 16  ;;  %s317_s11 = scalar_lea.hbm %s545_s0, 32 }
  0x16   : > { %p313_p2 = scmp.ne.s32.totalorder %s311_s2, %s312_s3  ;;  %p318_p5 = scmp.lt.s32.totalorder %s311_s2, %s545_s0 }
  0x17   : > { %p319_p8 = scmp.lt.s32.totalorder %s317_s11, %s312_s3 }
  0x18   : > { %p315_p4 = pnand %p314_p3, %p313_p2 }
  0x19   : > { %p320_p10 = por %p319_p8, %p318_p5 }
  0x1a   : > { %p316_p7 = pneg %p315_p4 }
  0x1c   : > { %p321_p9 = pnand %p320_p10, %p316_p7 }
  0x1e   : > { %324 = shalt.err (!%p321_p9)
}
  0x1f   : > { %269 = dma.hbm_to_vmem [thread:$0]  (!%p483_p13), %s99_s26, 256, %s101_s28, %s88_s30  }
  0x20   : > { %p106_p2 = pnand %p252_p0, %p105_p1 }
  0x21   : > { %s504_s16 = sand.u32 (!%p106_p2), 1, %s398_s7  }
  0x22   : > { %109 = sbr.rel (%p106_p2) target bundleno = 184 (0xb8), region = 24  ;;  %s253_s20 = sshll.u32 (!%p106_p2), %s504_s16, 4 }
  0x23   : > { %s112_s21 = scalar_lea.sflag (!%p106_p2), [#allocation3], %s504_s16  ;;  %s115_s22 = scalar_lea.vmem (!%p106_p2), [#allocation2], %s253_s20 }
  0x27   : > { %385 = dma.done.wait (%p461_p6), %s112_s21, 256  }
  0x28   : > { %387 = vsyncadd (%p461_p6), %s112_s21, 4294967040  ;;  %v135_v0 = vld [vmem:[%s115_s22] sm:$0xff]  ;;  %v136_v1 = vld [vmem:[%s115_s22 + $0x8] sm:$0xff]  ;;  %s261_s23 = sshll.u32 %s439_s10, 4  ;;  %s134_s26 = scalar_lea.vmem [#allocation5], %s253_s20 }
  0x29   : > { %v137_v2 = vadd.f32 %v136_v1, %v135_v0  ;;  %s171_s17 = scalar_lea.hbm %s546_s1, %s261_s23  ;;  %s173_s27 = sshll.u32 %s134_s26, 4  ;;  %s174_s27 = int_to_ptr.vmem [resolvable:$true] %s173_s27 }
  0x2a   : > { %s175_s28 = sshll.u32 %s171_s17, 4  ;;  %s160_s10 = scalar_lea.sflag [#allocation4], %s504_s16  ;;  %s176_s28 = int_to_ptr.hbm [resolvable:$true] %s175_s28 }
  0x2b   : > { %138 = vadd.xlane.f32.xlu0 %v137_v2  ;;  %s354_s29 = sshra.s32 %s176_s28, 4  ;;  %s360_s4 = scalar_lea.hbm %s546_s1, 32  ;;  %s355_s29 = int_to_ptr.hbm [resolvable:$true] %s354_s29 }
  0x2c   : > { %s356_s30 = scalar_lea.hbm %s355_s29, 16  ;;  %p361_p0 = scmp.lt.s32.totalorder %s355_s29, %s546_s1 }
  0x2d   : > { %p357_p6 = scmp.ne.s32.totalorder %s355_s29, %s356_s30  ;;  %p362_p1 = scmp.lt.s32.totalorder %s360_s4, %s356_s30 }
  0x2f   : > { %p358_p9 = pnand %p357_p6, %p468_p11  ;;  %p363_p3 = por %p362_p1, %p361_p0 }
  0x31   : > { %p359_p13 = pneg %p358_p9 }
  0x33   : > { %p364_p4 = pnand %p363_p3, %p359_p13 }
  0x9e   : > { %v139_v3 = vpop.xlane.xlu0 %138 }
  0x9f   : > { %v140_v4 = vadd.f32 1e-05, %v139_v3 }
  0xa1   : > { %308 = vrcp.f32 %v140_v4  ;;  %v152_v8 = vand.u32 2147483648, %v140_v4  ;;  %v150_v10 = vand.u32 2147483647, %v140_v4  ;;  %vm146_vm1 = vweird.f32 %v140_v4 }
  0xa3   : > { %v153_v12 = vor.u32 1.1754944e-38, %v152_v8  ;;  %vm151_vm3 = vcmp.eq.f32.partialorder %v150_v10, 8.507059e+37 }
  0xa7   : > { %v309_v5 = vpop.eup %308 }
  0xa8   : > { %v142_v6 = vmul.f32 %v309_v5, %v140_v4  ;;  %vm147_vm0 = vweird.f32 %v309_v5 }
  0xa9   : > { %vm148_vm2 = vmor %vm146_vm1, %vm147_vm0 }
  0xaa   : > { %v143_v7 = vsub.f32 1.0, %v142_v6 }
  0xac   : > { %v144_v9 = vmul.f32 %v309_v5, %v143_v7 }
  0xae   : > { %v145_v11 = vadd.f32 %v309_v5, %v144_v9 }
  0xb0   : > { %v149_v13 = vsel %vm148_vm2, %v309_v5, %v145_v11 }
  0xb1   : > { %v154_v14 = vsel %vm151_vm3, %v153_v12, %v149_v13 }
  0xb2   : > { %v155_v15 = vmul.f32 %v154_v14, %v135_v0  ;;  %v156_v16 = vmul.f32 %v154_v14, %v136_v1 }
  0xb4   : > { %157 = vst [vmem:[%s134_s26] sm:$0xff] %v155_v15 }
  0xb5   : > { %158 = vst [vmem:[%s134_s26 + $0x8] sm:$0xff] %v156_v16 }
  0xb6   : > { %367 = shalt.err (!%p364_p4)
}
  0xb7   : > { %264 = dma.vmem_to_hbm [thread:$0]  (%p468_p11), %s174_s27, 256, %s176_s28, %s160_s10  }
  0xb8 PF: > { %s187_s13 = sand.u32 1, %s394_s6   ;;  %p552_p7 = scmp.ge.s32.totalorder %s406_s9, 2 }
  0xb9   : > { %s188_s14 = scalar_lea.sflag [#allocation4], %s187_s13 }
  0xba   : > { %p271_p5 = pnand %p552_p7, %p472_p12 }
  0xbc   : > { %p272_p8 = pneg %p271_p5 }
  0xbe   : > { %389 = dma.done.wait (%p272_p8), %s188_s14, 256  }
  0xbf   : > { %391 = vsyncadd (%p272_p8), %s188_s14, 4294967040  ;;  %p14_p10 = scmp.ge.s32.totalorder %s443_s12, 4   ;;  %s553_s6 = smov %s398_s7 }
  0xc0   : > { %s554_s7 = smov %s402_s8  ;;  %s555_s8 = smov %s455_s15 }
  0xc1   : > { %s556_s9 = smov %s443_s12  ;;  %16 = sbr.rel (!%p14_p10) target bundleno = 5 (0x5), region = 69 }
  0xc6   :  { %194 = vsyncpa [#allocation3], 1 }
  0xc7   :  { %196 = vsyncpa [#allocation3 + $0x1], 1 }
  0xc8   :  { %197 = vsyncpa [#allocation4], 1 }
  0xc9   :  { %199 = vsyncpa [#allocation4 + $0x1], 1 }

</bundles_post_ra>
